<compile_context>
chip_gen: v7x
topology: tpu7x:2x2x1
jax: 0.10.0
libtpu: 0.0.40
codegen_flags: <defaults>
</compile_context>

<pallas_src>
import functools

import jax
import jax.numpy as jnp
import numpy as np
from jax.experimental import pallas as pl
from jax.experimental.pallas import tpu as pltpu


def imu_kernel(x_ref, w0_ref, b0_ref, wr_ref, br_ref,
               w1_ref, b1_ref, w2_ref, b2_ref, w3_ref, b3_ref,
               out_ref, *, num_layers, hidden):
    H = hidden

    def lstm_layer(h, w_bf16, b_f32):
        # Fused bi-directional cell (seq_len == 1, zero initial state).
        # Packed gate columns: [i_f|i_b | o_f|o_b | g_f|g_b]  (width 6H).
        gates = jnp.dot(h.astype(jnp.bfloat16), w_bf16,
                        preferred_element_type=jnp.float32) + b_f32
        sg = jax.nn.sigmoid(gates[:, :4 * H])        # [sig_i_f|sig_i_b|sig_o_f|sig_o_b]
        tg = jnp.tanh(gates[:, 4 * H:6 * H])         # [tanh_g_f|tanh_g_b]
        # h_out columns are already in PyTorch concat order [fwd | bwd].
        return sg[:, 2 * H:4 * H] * jnp.tanh(sg[:, :2 * H] * tg)   # (B, 2H)

    h = lstm_layer(x_ref[...], w0_ref[...], b0_ref[...])
    for l in range(1, num_layers):
        h = lstm_layer(h, wr_ref[l - 1], br_ref[l - 1])

    # fc head: Linear(+folded BatchNorm) -> SiLU -> Linear -> SiLU -> Linear.
    # TODO(synk): Dropout layers are identity in inference mode (no RNG mask).
    z = jnp.dot(h.astype(jnp.bfloat16), w1_ref[...],
                preferred_element_type=jnp.float32) + b1_ref[...]
    z = z * jax.nn.sigmoid(z)                        # SiLU
    z = jnp.dot(z.astype(jnp.bfloat16), w2_ref[...],
                preferred_element_type=jnp.float32) + b2_ref[...]
    z = z * jax.nn.sigmoid(z)                        # SiLU
    # Final (H//2 -> 1) layer: elementwise multiply + lane reduce (no 1-col MXU matmul).
    out_ref[...] = jnp.sum(z * w3_ref[...], axis=-1, keepdims=True) + b3_ref[...]


def init_params(key, input_dim, hidden, num_layers):
    """Returns (raw PyTorch-style params for the reference, packed kernel params)."""
    H = hidden
    keys = iter(jax.random.split(key, 8 * num_layers + 16))

    def u(shape, bound):
        return jax.random.uniform(next(keys), shape, jnp.float32, -bound, bound)

    stdv = 1.0 / float(np.sqrt(H))
    raw = {"w_ih": [], "b": []}
    for l in range(num_layers):
        in_dim = input_dim if l == 0 else 2 * H
        layer_w, layer_b = [], []
        for _d in range(2):                          # 0 = forward, 1 = backward
            w = u((4 * H, in_dim), stdv)             # PyTorch layout (4H, in_dim), [i;f;g;o]
            b_ih = u((4 * H,), stdv)
            b_hh = u((4 * H,), stdv)
            layer_w.append(w)
            layer_b.append(b_ih + b_hh)
        raw["w_ih"].append(layer_w)
        raw["b"].append(layer_b)

    # BatchNorm1d(2H): affine params + running stats (deterministic synthetic).
    raw["gamma"] = u((2 * H,), 1.0) + 1.0
    raw["beta"] = u((2 * H,), 0.5)
    raw["mean"] = u((2 * H,), 0.5)
    raw["var"] = jax.random.uniform(next(keys), (2 * H,), jnp.float32, 0.5, 1.5)

    bd1 = 1.0 / float(np.sqrt(2 * H))
    bd2 = 1.0 / float(np.sqrt(H))
    bd3 = 1.0 / float(np.sqrt(H // 2))
    raw["w1"] = u((2 * H, H), bd1);     raw["b1"] = u((H,), bd1)        # stored (in, out)
    raw["w2"] = u((H, H // 2), bd2);    raw["b2"] = u((H // 2,), bd2)
    raw["w3"] = u((H // 2,), bd3);      raw["b3"] = u((1,), bd3)

    # ---- pack both directions into one gate-major weight per layer ----
    def pack(layer_w, layer_b):
        wf, wb = layer_w
        bf, bb = layer_b
        w = jnp.concatenate([wf[0:H].T, wb[0:H].T,                   # i_f | i_b
                             wf[3 * H:4 * H].T, wb[3 * H:4 * H].T,   # o_f | o_b
                             wf[2 * H:3 * H].T, wb[2 * H:3 * H].T],  # g_f | g_b
                            axis=1)                                  # (in_dim, 6H)
        b = jnp.concatenate([bf[0:H], bb[0:H],
                             bf[3 * H:4 * H], bb[3 * H:4 * H],
                             bf[2 * H:3 * H], bb[2 * H:3 * H]])[None, :]
        return w, b

    w0, b0 = pack(raw["w_ih"][0], raw["b"][0])
    if num_layers > 1:
        packed = [pack(raw["w_ih"][l], raw["b"][l]) for l in range(1, num_layers)]
        wr = jnp.stack([p[0] for p in packed])
        br = jnp.stack([p[1] for p in packed])
    else:                                            # unused dummy (never read)
        wr = jnp.zeros((1, 2 * H, 6 * H), jnp.float32)
        br = jnp.zeros((1, 1, 6 * H), jnp.float32)

    # ---- fold eval-mode BatchNorm into (w1, b1) ----
    scale = raw["gamma"] * jax.lax.rsqrt(raw["var"] + 1e-5)
    w1f = scale[:, None] * raw["w1"]
    b1f = raw["b1"] + (raw["beta"] - raw["mean"] * scale) @ raw["w1"]

    kp = dict(
        w0=w0.astype(jnp.bfloat16), b0=b0,
        wr=wr.astype(jnp.bfloat16), br=br,
        w1=w1f.astype(jnp.bfloat16), b1=b1f[None, :],
        w2=raw["w2"].astype(jnp.bfloat16), b2=raw["b2"][None, :],
        w3=raw["w3"][None, :], b3=raw["b3"][None, :],
    )
    return raw, kp


def imu_forward(x, kp, *, num_layers, hidden):
    B, D = x.shape
    bb = min(128, B)                                 # batch tile (parallel axis)
    Bp = pl.cdiv(B, bb) * bb
    if Bp != B:
        x = jnp.pad(x, ((0, Bp - B), (0, 0)))

    kernel = functools.partial(imu_kernel, num_layers=num_layers, hidden=hidden)

    def full_spec(a):
        nd = a.ndim
        return pl.BlockSpec(a.shape, lambda i, nd=nd: (0,) * nd)

    args = (x, kp["w0"], kp["b0"], kp["wr"], kp["br"],
            kp["w1"], kp["b1"], kp["w2"], kp["b2"], kp["w3"], kp["b3"])
    in_specs = [pl.BlockSpec((bb, D), lambda i: (i, 0))]
    in_specs += [full_spec(a) for a in args[1:]]

    out = pl.pallas_call(
        kernel,
        out_shape=jax.ShapeDtypeStruct((Bp, 1), jnp.float32),
        grid=(Bp // bb,),
        in_specs=in_specs,
        out_specs=pl.BlockSpec((bb, 1), lambda i: (i, 0)),
        compiler_params=pltpu.CompilerParams(dimension_semantics=("parallel",)),
    )(*args)
    return out[:B]


def ref_forward(x, raw, *, num_layers, hidden):
    """Faithful (unfused, per-direction, explicit BN) reference; matmul inputs
    cast to bf16 like the kernel so only the structural optimizations differ."""
    H = hidden
    bf16 = lambda a: a.astype(jnp.bfloat16)
    h = x
    for l in range(num_layers):
        outs = []
        for d in range(2):
            W = raw["w_ih"][l][d]                    # (4H, in_dim)
            b = raw["b"][l][d]                       # (4H,) = b_ih + b_hh
            gates = jnp.dot(bf16(h), bf16(W.T),
                            preferred_element_type=jnp.float32) + b
            i = jax.nn.sigmoid(gates[:, 0:H])
            g = jnp.tanh(gates[:, 2 * H:3 * H])
            o = jax.nn.sigmoid(gates[:, 3 * H:4 * H])
            outs.append(o * jnp.tanh(i * g))         # f*c0 == 0
        h = jnp.concatenate(outs, axis=-1)           # [fwd | bwd]
    scale = raw["gamma"] * jax.lax.rsqrt(raw["var"] + 1e-5)
    hn = (h - raw["mean"]) * scale + raw["beta"]
    z = jnp.dot(bf16(hn), bf16(raw["w1"]), preferred_element_type=jnp.float32) + raw["b1"]
    z = z * jax.nn.sigmoid(z)
    z = jnp.dot(bf16(z), bf16(raw["w2"]), preferred_element_type=jnp.float32) + raw["b2"]
    z = z * jax.nn.sigmoid(z)
    return z @ raw["w3"][:, None] + raw["b3"]


if __name__ == "__main__":
    batch, input_dim, hidden, num_layers = 8, 16, 32, 2

    key = jax.random.PRNGKey(0)
    kx, kp_key = jax.random.split(key)
    x = jax.random.normal(kx, (batch, input_dim), jnp.float32)
    raw, kp = init_params(kp_key, input_dim, hidden, num_layers)

    out = imu_forward(x, kp, num_layers=num_layers, hidden=hidden)
    out = jax.block_until_ready(out)

    expected = ref_forward(x, raw, num_layers=num_layers, hidden=hidden)
    np.testing.assert_allclose(np.asarray(out), np.asarray(expected),
                               rtol=2e-2, atol=2e-2)
    assert out.shape == (batch, 1)
    print("KERNEL_OK")
</pallas_src>

<mosaic_0001>
module attributes {stable_mosaic.version = 11 : i64} {
  func.func @imu_kernel(%arg0: i32, %arg1: memref<8x16xf32, #tpu.memory_space<vmem>>, %arg2: memref<16x192xbf16, #tpu.memory_space<vmem>>, %arg3: memref<1x192xf32, #tpu.memory_space<vmem>>, %arg4: memref<1x64x192xbf16, #tpu.memory_space<vmem>>, %arg5: memref<1x1x192xf32, #tpu.memory_space<vmem>>, %arg6: memref<64x32xbf16, #tpu.memory_space<vmem>>, %arg7: memref<1x32xf32, #tpu.memory_space<vmem>>, %arg8: memref<32x16xbf16, #tpu.memory_space<vmem>>, %arg9: memref<1x16xf32, #tpu.memory_space<vmem>>, %arg10: memref<1x16xf32, #tpu.memory_space<vmem>>, %arg11: memref<1x1xf32, #tpu.memory_space<vmem>>, %arg12: memref<8x1xf32, #tpu.memory_space<vmem>>) attributes {dimension_semantics = [#tpu.dimension_semantics<parallel>], iteration_bounds = array<i64: 1>, scalar_prefetch = 0 : i64, scratch_operands = 0 : i64, tpu.core_type = #tpu.core_type<tc>, window_params = [{transform_indices = @transform_0, window_bounds = array<i64: 8, 16>}, {pipeline_mode = #tpu.pipeline_mode<synchronous>, transform_indices = @transform_1, window_bounds = array<i64: 16, 192>}, {pipeline_mode = #tpu.pipeline_mode<synchronous>, transform_indices = @transform_2, window_bounds = array<i64: 1, 192>}, {pipeline_mode = #tpu.pipeline_mode<synchronous>, transform_indices = @transform_3, window_bounds = array<i64: 1, 64, 192>}, {pipeline_mode = #tpu.pipeline_mode<synchronous>, transform_indices = @transform_4, window_bounds = array<i64: 1, 1, 192>}, {pipeline_mode = #tpu.pipeline_mode<synchronous>, transform_indices = @transform_5, window_bounds = array<i64: 64, 32>}, {pipeline_mode = #tpu.pipeline_mode<synchronous>, transform_indices = @transform_6, window_bounds = array<i64: 1, 32>}, {pipeline_mode = #tpu.pipeline_mode<synchronous>, transform_indices = @transform_7, window_bounds = array<i64: 32, 16>}, {pipeline_mode = #tpu.pipeline_mode<synchronous>, transform_indices = @transform_8, window_bounds = array<i64: 1, 16>}, {pipeline_mode = #tpu.pipeline_mode<synchronous>, transform_indices = @transform_9, window_bounds = array<i64: 1, 16>}, {pipeline_mode = #tpu.pipeline_mode<synchronous>, transform_indices = @transform_10, window_bounds = array<i64: 1, 1>}, {transform_indices = @transform_11, window_bounds = array<i64: 8, 1>}]} {
    %c0 = arith.constant 0 : index
    %c0_0 = arith.constant 0 : index
    %0 = vector.load %arg1[%c0, %c0_0] : memref<8x16xf32, #tpu.memory_space<vmem>>, vector<8x16xf32>
    %c0_1 = arith.constant 0 : index
    %c0_2 = arith.constant 0 : index
    %1 = vector.load %arg2[%c0_1, %c0_2] : memref<16x192xbf16, #tpu.memory_space<vmem>>, vector<16x192xbf16>
    %c0_3 = arith.constant 0 : index
    %c0_4 = arith.constant 0 : index
    %2 = vector.load %arg3[%c0_3, %c0_4] : memref<1x192xf32, #tpu.memory_space<vmem>>, vector<1x192xf32>
    %3 = arith.truncf %0 : vector<8x16xf32> to vector<8x16xbf16>
    %cst = arith.constant dense<0.000000e+00> : vector<8x192xf32>
    %4 = tpu.matmul %3, %1, %cst {dimension_numbers = #tpu.dot_dimension_numbers<[1], [0], [0], [1], [0, 0, 1, 1], [], []>} : vector<8x16xbf16>, vector<16x192xbf16>, vector<8x192xf32> -> vector<8x192xf32>
    %5 = vector.broadcast %2 : vector<1x192xf32> to vector<8x192xf32>
    %6 = arith.addf %4, %5 : vector<8x192xf32>
    %7 = vector.extract_strided_slice %6 {offsets = [0, 0], sizes = [8, 128], strides = [1, 1]} : vector<8x192xf32> to vector<8x128xf32>
    %8 = arith.negf %7 : vector<8x128xf32>
    %9 = math.exp %8 : vector<8x128xf32>
    %cst_5 = arith.constant 1.000000e+00 : f32
    %10 = vector.broadcast %cst_5 : f32 to vector<8x128xf32>
    %11 = arith.addf %10, %9 : vector<8x128xf32>
    %12 = arith.divf %10, %11 : vector<8x128xf32>
    %13 = vector.extract_strided_slice %6 {offsets = [0, 128], sizes = [8, 64], strides = [1, 1]} : vector<8x192xf32> to vector<8x64xf32>
    %14 = math.tanh %13 : vector<8x64xf32>
    %15 = vector.extract_strided_slice %12 {offsets = [0, 64], sizes = [8, 64], strides = [1, 1]} : vector<8x128xf32> to vector<8x64xf32>
    %16 = vector.extract_strided_slice %12 {offsets = [0, 0], sizes = [8, 64], strides = [1, 1]} : vector<8x128xf32> to vector<8x64xf32>
    %17 = arith.mulf %16, %14 : vector<8x64xf32>
    %18 = math.tanh %17 : vector<8x64xf32>
    %19 = arith.mulf %15, %18 : vector<8x64xf32>
    %c0_6 = arith.constant 0 : index
    %c0_7 = arith.constant 0 : index
    %c0_8 = arith.constant 0 : index
    %20 = vector.load %arg4[%c0_6, %c0_7, %c0_8] : memref<1x64x192xbf16, #tpu.memory_space<vmem>>, vector<1x64x192xbf16>
    %21 = vector.shape_cast %20 : vector<1x64x192xbf16> to vector<64x192xbf16>
    %c0_9 = arith.constant 0 : index
    %c0_10 = arith.constant 0 : index
    %c0_11 = arith.constant 0 : index
    %22 = vector.load %arg5[%c0_9, %c0_10, %c0_11] : memref<1x1x192xf32, #tpu.memory_space<vmem>>, vector<1x1x192xf32>
    %23 = vector.shape_cast %22 : vector<1x1x192xf32> to vector<1x192xf32>
    %24 = arith.truncf %19 : vector<8x64xf32> to vector<8x64xbf16>
    %cst_12 = arith.constant dense<0.000000e+00> : vector<8x192xf32>
    %25 = tpu.matmul %24, %21, %cst_12 {dimension_numbers = #tpu.dot_dimension_numbers<[1], [0], [0], [1], [0, 0, 1, 1], [], []>} : vector<8x64xbf16>, vector<64x192xbf16>, vector<8x192xf32> -> vector<8x192xf32>
    %26 = vector.broadcast %23 : vector<1x192xf32> to vector<8x192xf32>
    %27 = arith.addf %25, %26 : vector<8x192xf32>
    %28 = vector.extract_strided_slice %27 {offsets = [0, 0], sizes = [8, 128], strides = [1, 1]} : vector<8x192xf32> to vector<8x128xf32>
    %29 = arith.negf %28 : vector<8x128xf32>
    %30 = math.exp %29 : vector<8x128xf32>
    %cst_13 = arith.constant 1.000000e+00 : f32
    %31 = vector.broadcast %cst_13 : f32 to vector<8x128xf32>
    %32 = arith.addf %31, %30 : vector<8x128xf32>
    %33 = arith.divf %31, %32 : vector<8x128xf32>
    %34 = vector.extract_strided_slice %27 {offsets = [0, 128], sizes = [8, 64], strides = [1, 1]} : vector<8x192xf32> to vector<8x64xf32>
    %35 = math.tanh %34 : vector<8x64xf32>
    %36 = vector.extract_strided_slice %33 {offsets = [0, 64], sizes = [8, 64], strides = [1, 1]} : vector<8x128xf32> to vector<8x64xf32>
    %37 = vector.extract_strided_slice %33 {offsets = [0, 0], sizes = [8, 64], strides = [1, 1]} : vector<8x128xf32> to vector<8x64xf32>
    %38 = arith.mulf %37, %35 : vector<8x64xf32>
    %39 = math.tanh %38 : vector<8x64xf32>
    %40 = arith.mulf %36, %39 : vector<8x64xf32>
    %41 = arith.truncf %40 : vector<8x64xf32> to vector<8x64xbf16>
    %c0_14 = arith.constant 0 : index
    %c0_15 = arith.constant 0 : index
    %42 = vector.load %arg6[%c0_14, %c0_15] : memref<64x32xbf16, #tpu.memory_space<vmem>>, vector<64x32xbf16>
    %cst_16 = arith.constant dense<0.000000e+00> : vector<8x32xf32>
    %43 = tpu.matmul %41, %42, %cst_16 {dimension_numbers = #tpu.dot_dimension_numbers<[1], [0], [0], [1], [0, 0, 1, 1], [], []>} : vector<8x64xbf16>, vector<64x32xbf16>, vector<8x32xf32> -> vector<8x32xf32>
    %c0_17 = arith.constant 0 : index
    %c0_18 = arith.constant 0 : index
    %44 = vector.load %arg7[%c0_17, %c0_18] : memref<1x32xf32, #tpu.memory_space<vmem>>, vector<1x32xf32>
    %45 = vector.broadcast %44 : vector<1x32xf32> to vector<8x32xf32>
    %46 = arith.addf %43, %45 : vector<8x32xf32>
    %47 = arith.negf %46 : vector<8x32xf32>
    %48 = math.exp %47 : vector<8x32xf32>
    %cst_19 = arith.constant 1.000000e+00 : f32
    %49 = vector.broadcast %cst_19 : f32 to vector<8x32xf32>
    %50 = arith.addf %49, %48 : vector<8x32xf32>
    %51 = arith.divf %49, %50 : vector<8x32xf32>
    %52 = arith.mulf %46, %51 : vector<8x32xf32>
    %53 = arith.truncf %52 : vector<8x32xf32> to vector<8x32xbf16>
    %c0_20 = arith.constant 0 : index
    %c0_21 = arith.constant 0 : index
    %54 = vector.load %arg8[%c0_20, %c0_21] : memref<32x16xbf16, #tpu.memory_space<vmem>>, vector<32x16xbf16>
    %cst_22 = arith.constant dense<0.000000e+00> : vector<8x16xf32>
    %55 = tpu.matmul %53, %54, %cst_22 {dimension_numbers = #tpu.dot_dimension_numbers<[1], [0], [0], [1], [0, 0, 1, 1], [], []>} : vector<8x32xbf16>, vector<32x16xbf16>, vector<8x16xf32> -> vector<8x16xf32>
    %c0_23 = arith.constant 0 : index
    %c0_24 = arith.constant 0 : index
    %56 = vector.load %arg9[%c0_23, %c0_24] : memref<1x16xf32, #tpu.memory_space<vmem>>, vector<1x16xf32>
    %57 = vector.broadcast %56 : vector<1x16xf32> to vector<8x16xf32>
    %58 = arith.addf %55, %57 : vector<8x16xf32>
    %59 = arith.negf %58 : vector<8x16xf32>
    %60 = math.exp %59 : vector<8x16xf32>
    %cst_25 = arith.constant 1.000000e+00 : f32
    %61 = vector.broadcast %cst_25 : f32 to vector<8x16xf32>
    %62 = arith.addf %61, %60 : vector<8x16xf32>
    %63 = arith.divf %61, %62 : vector<8x16xf32>
    %64 = arith.mulf %58, %63 : vector<8x16xf32>
    %c0_26 = arith.constant 0 : index
    %c0_27 = arith.constant 0 : index
    %65 = vector.load %arg10[%c0_26, %c0_27] : memref<1x16xf32, #tpu.memory_space<vmem>>, vector<1x16xf32>
    %66 = vector.broadcast %65 : vector<1x16xf32> to vector<8x16xf32>
    %67 = arith.mulf %64, %66 : vector<8x16xf32>
    %cst_28 = arith.constant dense<0.000000e+00> : vector<8xf32>
    %68 = vector.multi_reduction <add>, %67, %cst_28 [1] : vector<8x16xf32> to vector<8xf32>
    %69 = vector.shape_cast %68 : vector<8xf32> to vector<8x1xf32>
    %c0_29 = arith.constant 0 : index
    %c0_30 = arith.constant 0 : index
    %70 = vector.load %arg11[%c0_29, %c0_30] : memref<1x1xf32, #tpu.memory_space<vmem>>, vector<1x1xf32>
    %71 = vector.broadcast %70 : vector<1x1xf32> to vector<8x1xf32>
    %72 = arith.addf %69, %71 : vector<8x1xf32>
    %c0_31 = arith.constant 0 : index
    %c0_32 = arith.constant 0 : index
    %73 = vector.load %arg12[%c0_31, %c0_32] : memref<8x1xf32, #tpu.memory_space<vmem>>, vector<8x1xf32>
    tpu.vector_store %arg12[%c0_31, %c0_32], %72 {strides = array<i32>} : memref<8x1xf32, #tpu.memory_space<vmem>>, vector<8x1xf32>,
    return
  }
  func.func @transform_0(%arg0: i32) -> (i32, i32) {
    %c0_i32 = arith.constant 0 : i32
    %c0_i32_0 = arith.constant 0 : i32
    return %arg0, %c0_i32 : i32, i32
  }
  func.func @transform_1(%arg0: i32) -> (i32, i32) {
    %c0_i32 = arith.constant 0 : i32
    %c0_i32_0 = arith.constant 0 : i32
    %c0_i32_1 = arith.constant 0 : i32
    return %c0_i32, %c0_i32_0 : i32, i32
  }
  func.func @transform_2(%arg0: i32) -> (i32, i32) {
    %c0_i32 = arith.constant 0 : i32
    %c0_i32_0 = arith.constant 0 : i32
    %c0_i32_1 = arith.constant 0 : i32
    return %c0_i32, %c0_i32_0 : i32, i32
  }
  func.func @transform_3(%arg0: i32) -> (i32, i32, i32) {
    %c0_i32 = arith.constant 0 : i32
    %c0_i32_0 = arith.constant 0 : i32
    %c0_i32_1 = arith.constant 0 : i32
    %c0_i32_2 = arith.constant 0 : i32
    return %c0_i32, %c0_i32_0, %c0_i32_1 : i32, i32, i32
  }
  func.func @transform_4(%arg0: i32) -> (i32, i32, i32) {
    %c0_i32 = arith.constant 0 : i32
    %c0_i32_0 = arith.constant 0 : i32
    %c0_i32_1 = arith.constant 0 : i32
    %c0_i32_2 = arith.constant 0 : i32
    return %c0_i32, %c0_i32_0, %c0_i32_1 : i32, i32, i32
  }
  func.func @transform_5(%arg0: i32) -> (i32, i32) {
    %c0_i32 = arith.constant 0 : i32
    %c0_i32_0 = arith.constant 0 : i32
    %c0_i32_1 = arith.constant 0 : i32
    return %c0_i32, %c0_i32_0 : i32, i32
  }
  func.func @transform_6(%arg0: i32) -> (i32, i32) {
    %c0_i32 = arith.constant 0 : i32
    %c0_i32_0 = arith.constant 0 : i32
    %c0_i32_1 = arith.constant 0 : i32
    return %c0_i32, %c0_i32_0 : i32, i32
  }
  func.func @transform_7(%arg0: i32) -> (i32, i32) {
    %c0_i32 = arith.constant 0 : i32
    %c0_i32_0 = arith.constant 0 : i32
    %c0_i32_1 = arith.constant 0 : i32
    return %c0_i32, %c0_i32_0 : i32, i32
  }
  func.func @transform_8(%arg0: i32) -> (i32, i32) {
    %c0_i32 = arith.constant 0 : i32
    %c0_i32_0 = arith.constant 0 : i32
    %c0_i32_1 = arith.constant 0 : i32
    return %c0_i32, %c0_i32_0 : i32, i32
  }
  func.func @transform_9(%arg0: i32) -> (i32, i32) {
    %c0_i32 = arith.constant 0 : i32
    %c0_i32_0 = arith.constant 0 : i32
    %c0_i32_1 = arith.constant 0 : i32
    return %c0_i32, %c0_i32_0 : i32, i32
  }
  func.func @transform_10(%arg0: i32) -> (i32, i32) {
    %c0_i32 = arith.constant 0 : i32
    %c0_i32_0 = arith.constant 0 : i32
    %c0_i32_1 = arith.constant 0 : i32
    return %c0_i32, %c0_i32_0 : i32, i32
  }
  func.func @transform_11(%arg0: i32) -> (i32, i32) {
    %c0_i32 = arith.constant 0 : i32
    %c0_i32_0 = arith.constant 0 : i32
    return %arg0, %c0_i32 : i32, i32
  }
}

</mosaic_0001>

<bundles_post_ra>
// kernel: tpu_custom_call.1
= control target key start
LH: loop header
LB: loop body
LE: loop exit
PB: predicated region body
PF: predicated region fallthrough
CT: control target
= control target key end

     0   :  { %s797_s0 = inlined_call_operand.hbm [shape: f32[8,16], index: 0, kind: input, shape index: {}]   ;;  %s798_s1 = inlined_call_operand.hbm [shape: bf16[16,192], index: 1, kind: input, shape index: {}]   ;;  %s799_s2 = inlined_call_operand.vmem [shape: f32[1,192], index: 2, kind: input, shape index: {}]   ;;  %s800_s3 = inlined_call_operand.vmem [shape: bf16[1,64,192], index: 3, kind: input, shape index: {}]   ;;  %s801_s4 = inlined_call_operand.vmem [shape: f32[1,1,192], index: 4, kind: input, shape index: {}]   ;;  %s802_s5 = inlined_call_operand.vmem [shape: bf16[64,32], index: 5, kind: input, shape index: {}]   ;;  %s803_s6 = inlined_call_operand.vmem [shape: f32[1,32], index: 6, kind: input, shape index: {}]   ;;  %s804_s7 = inlined_call_operand.vmem [shape: bf16[32,16], index: 7, kind: input, shape index: {}]   ;;  %s805_s8 = inlined_call_operand.vmem [shape: f32[1,16], index: 8, kind: input, shape index: {}]   ;;  %s806_s9 = inlined_call_operand.vmem [shape: f32[1,16], index: 9, kind: input, shape index: {}]   ;;  %s807_s10 = inlined_call_operand.<no memory space> [shape: f32[1,1], index: 10, kind: input, shape index: {}]   ;;  %s808_s11 = inlined_call_operand.vmem [shape: f32[8,1], index: 11, kind: output, shape index: {}]  }
   0x1   :  { %v16_v0 = vstv %s807_s10 }
   0x2   :  { %17 = vst [vmem:[#allocation2] sm:$0x1] %v16_v0 }
   0x3   :  { %18 = vsyncpa [#allocation4], 0 }
   0x4   :  { %19 = vsyncpa [#allocation6], 0  ;;  %s627_s19 = smov [#allocation3]   ;;  %s628_s21 = smov [#allocation5]  }
   0x5   :  { %s26_s20 = sshll.u32 %s627_s19, 4  ;;  %s35_s22 = sshll.u32 %s628_s21, 4  ;;  %s27_s20 = int_to_ptr.vmem [resolvable:$true] %s26_s20  ;;  %s698_s22 = int_to_ptr.vmem [resolvable:$true] %s35_s22 }
   0x6   :  { %s579_s25 = scalar_lea.hbm %s797_s0, 128 }
   0x7   :  { %p580_p0 = scmp.ne.s32.totalorder %s797_s0, %s579_s25  ;;  %p583_p1 = scmp.lt.u32.totalorder %s579_s25, %s797_s0 }
   0x9   :  { %p585_p2 = pnand %p583_p1, %p580_p0 }
   0xb   :  { %588 = shalt.err (!%p585_p2)
}
   0xc   :  { %s589_s29 = scalar_lea.vmem %s27_s20, 128  ;;  %p594_p4 = scmp.lt.s32.totalorder %s27_s20, %s27_s20 }
   0xd   :  { %p590_p3 = scmp.ne.s32.totalorder %s27_s20, %s589_s29  ;;  %p595_p5 = scmp.lt.s32.totalorder %s589_s29, %s589_s29 }
   0xf   :  { %p596_p6 = por %p595_p5, %p594_p4 }
  0x11   :  { %p597_p7 = pnand %p596_p6, %p590_p3 }
  0x13   :  { %600 = shalt.err (!%p597_p7)
}
  0x14   :  { %29 = dma.hbm_to_vmem [thread:$0]  %s797_s0, 128, %s27_s20, [#allocation4]  }
  0x15   :  { %s601_s15 = scalar_lea.hbm %s798_s1, 256 }
  0x16   :  { %p602_p8 = scmp.ne.s32.totalorder %s798_s1, %s601_s15  ;;  %p605_p9 = scmp.lt.u32.totalorder %s601_s15, %s798_s1 }
  0x18   :  { %p607_p10 = pnand %p605_p9, %p602_p8 }
  0x1a   :  { %610 = shalt.err (!%p607_p10)
}
  0x1b   :  { %s611_s21 = scalar_lea.vmem %s698_s22, 256  ;;  %p616_p12 = scmp.lt.s32.totalorder %s698_s22, %s698_s22 }
  0x1c   :  { %p612_p11 = scmp.ne.s32.totalorder %s698_s22, %s611_s21  ;;  %p617_p13 = scmp.lt.s32.totalorder %s611_s21, %s611_s21 }
  0x1e   :  { %p618_p0 = por %p617_p13, %p616_p12 }
  0x20   :  { %p619_p1 = pnand %p618_p0, %p612_p11 }
  0x22   :  { %622 = shalt.err (!%p619_p1)
}
  0x23   :  { %s629_s0 = smov 128   ;;  %s630_s20 = smov 8  }
  0x24   :  { %41 = dma.hbm_to_vmem [thread:$0]  %s798_s1, 256, %s698_s22, [#allocation6], %s629_s0, %s629_s0, %s630_s20  }
  0x25   :  { %623 = dma.done.wait [#allocation4], 128  }
  0x26   :  { %624 = vsyncadd [#allocation4], 4294967168 }
  0x27   :  { %625 = dma.done.wait [#allocation6], 256  }
  0x28   :  { %626 = vsyncadd [#allocation6], 4294967040  ;;  %v631_v1 = vmov 0   ;;  %v534_v2 = vld [vmem:[#allocation5 + $0x4] ss:$8 sps:$4 sm:$0xff]   ;;  %v67_v4 = vld [vmem:[#allocation3] sm:$0xff]  ;;  %v73_v6 = vlaneseq }
  0x29   :  { %129 = vmatprep.mubr.bf16.mxu0 %v631_v1  ;;  %252 = vmatprep.mubr.bf16.mxu1 %v631_v1  ;;  %v536_v3 = vld [vmem:[#allocation5] ss:$8 sps:$4 sm:$0xff]   ;;  %v71_v5 = vpack.c.bf16 %v67_v4, %v67_v4  ;;  %vm93_vm0 = vcmask 130048   ;;  %v70_v9 = vld [vmem:[%s799_s2] sm:$0x3]  ;;  %s632_s18 = smov 64  }
  0x2a   :  { %97 = vmatprep.subr.bf16.mxu0 %v534_v2  ;;  %v74_v7 = vshrl.u32 %v73_v6, 7  ;;  %v537_v25 = vld [vmem:[%s800_s3 + $0x4] ss:$8 sps:$4 sm:$0xff]   ;;  %v539_v26 = vld [vmem:[%s800_s3] ss:$8 sps:$4 sm:$0xff]   ;;  %vm216_vm1 = vcmask 523264  }
  0x2b   :  { %98 = vmatpush1.bf16.msra.mxu0 %v536_v3  ;;  %v540_v27 = vld [vmem:[%s800_s3 + $0x14] ss:$8 sps:$4 sm:$0xff]   ;;  %220 = vmatprep.subr.bf16.mxu1 %v537_v25  ;;  %v542_v28 = vld [vmem:[%s800_s3 + $0x10] ss:$8 sps:$4 sm:$0xff]   ;;  %v543_v29 = vld [vmem:[%s800_s3 + $0x24] ss:$8 sps:$4 sm:$0xff]  }
  0x2c   :  { %v75_v8 = vsub.s32 0, %v74_v7  ;;  %v79_v17 = vsub.s32 1, %v74_v7  ;;  %221 = vmatpush1.bf16.msra.mxu1 %v539_v26  ;;  %v545_v30 = vld [vmem:[%s800_s3 + $0x20] ss:$8 sps:$4 sm:$0xff]   ;;  %v546_v32 = vld [vmem:[%s800_s3 + $0x34] ss:$8 sps:$4 sm:$0xff]  }
  0x2d   :  { %222 = vmatprep.subr.bf16.mxu1 %v540_v27  ;;  %v548_v33 = vld [vmem:[%s800_s3 + $0x30] ss:$8 sps:$4 sm:$0xff]   ;;  %v160_v38 = vld [vmem:[%s801_s4] sm:$0x3]  ;;  %v633_v54 = vmov 0.0   ;;  %vm634_vm2 = vmmov 0  }
  0x2e   :  { %472 = vmatmul.mubr.msk.bf16.vlgmr.msra.gmra.mrb[0].mxu0 %vm93_vm0, %v71_v5  ;;  %v76_v10 = vrot.slane %v70_v9, %v75_v8  ;;  %v80_v18 = vrot.slane %v70_v9, %v79_v17  ;;  %v166_v39 = vrot.slane %v160_v38, %v75_v8  ;;  %v170_v46 = vrot.slane %v160_v38, %v79_v17  ;;  %v549_v53 = vld [vmem:[%s802_s5] sm:$0xff]   ;;  %v550_v55 = vld [vmem:[%s802_s5 + $0x8] sm:$0xff]   ;;  %v551_v56 = vld [vmem:[%s802_s5 + $0x10] sm:$0xff]  }
  0x2f   :  { %506 = vmatprep.subr.bf16.mxu0 %v633_v54  ;;  %514 = vmatprep.mubr.msk.bf16.mxu0 %vm634_vm2, %v633_v54  ;;  %v552_v58 = vld [vmem:[%s802_s5 + $0x18] sm:$0xff]   ;;  %v553_v63 = vld [vmem:[%s804_s7] sm:$0xff]   ;;  %v554_v0 = vld [vmem:[%s804_s7 + $0x8] sm:$0xff]   ;;  %vm392_vm3 = vcmask 261120   ;;  %vm462_vm4 = vcmask 7168  }
  0x30   :  { %223 = vmatpush1.bf16.msra.mxu1 %v542_v28  ;;  %507 = vmatpush3.bf16.msra.mxu0 %v549_v53  ;;  %v484_v1 = vld [vmem:[%s803_s6] ss:$0 sm:$0xff] }
  0x31   :  { %224 = vmatprep.subr.bf16.mxu1 %v543_v29  ;;  %508 = vmatprep.subr.bf16.mxu0 %v633_v54  ;;  %v497_v27 = vld [vmem:[#allocation2] ss:$0 sm:$0xff] }
  0x34   :  { %225 = vmatpush1.bf16.msra.mxu1 %v545_v30  ;;  %509 = vmatpush3.bf16.msra.mxu0 %v550_v55 }
  0x35   :  { %226 = vmatprep.subr.bf16.mxu1 %v546_v32  ;;  %510 = vmatprep.subr.bf16.mxu0 %v633_v54 }
  0x38   :  { %227 = vmatpush1.bf16.msra.mxu1 %v548_v33  ;;  %511 = vmatpush3.bf16.msra.mxu0 %v551_v56 }
  0x39   :  { %518 = vmatprep.subr.bf16.mxu1 %v633_v54  ;;  %512 = vmatprep.subr.bf16.mxu0 %v633_v54 }
  0x3c   :  { %513 = vmatpush3.bf16.msra.mxu0 %v552_v58 }
 0x101   :  { %v131_v11 = vpop.f32.mrb[0].mxu0 }
 0x102   :  { %v132_v12 = vadd.f32 %v131_v11, %v76_v10  ;;  %v133_v13 = vpop.f32.mrb[1].mxu0 }
 0x103   :  { %v135_v14 = vpop.f32.mrb[2].mxu0  ;;  %v134_v19 = vadd.f32 %v133_v13, %v80_v18  ;;  %v491_v13 = vld [vmem:[%s805_s8] ss:$0 sm:$0xff] }
 0x104   :  { %v473_v15 = vmul.f32 -1.442695, %v132_v12  ;;  %v136_v16 = vpop.f32.mrb[3].mxu0 }
 0x106   :  { %555 = vpow2.f32 %v473_v15 }
 0x107   :  { %557 = vtanh.f32 %v134_v19 }
 0x110   :  { %v556_v20 = vpop.eup %555 }
 0x111   :  { %v141_v21 = vadd.f32 1.0, %v556_v20  ;;  %v558_v22 = vpop.eup %557 }
 0x113   :  { %559 = vrcp.f32 %v141_v21 }
 0x11d   :  { %v560_v23 = vpop.eup %559 }
 0x11e   :  { %v145_v24 = vmul.f32 %v560_v23, %v558_v22 }
 0x120   :  { %561 = vtanh.f32 %v145_v24 }
 0x12a   :  { %v562_v31 = vpop.eup %561 }
 0x12b   :  { %148 = vrot.lane.b32.xlu0 %v562_v31, %s632_s18 }
 0x19d   :  { %v149_v34 = vpop.permute.xlu0 %148 }
 0x19e   :  { %v151_v35 = vmul.f32 %v560_v23, %v149_v34  ;;  %v496_v23 = vld [vmem:[%s806_s9] ss:$0 sm:$0xff] }
 0x1a0   :  { %v161_v36 = vpack.c.bf16 %v151_v35, %v151_v35 }
 0x1a2   :  { %174 = vrot.lane.b32.xlu0 %v161_v36, %s632_s18 }
 0x214   :  { %v175_v37 = vpop.permute.xlu0 %174 }
 0x215   :  { %482 = vmatmul.mubr.msk.bf16.vlgmr.msra.gmra.mrb[0].mxu1 %vm216_vm1, %v175_v37 }
 0x216   :  { %522 = vmatprep.mubr.msk.bf16.mxu1 %vm634_vm2, %v633_v54  ;;  %519 = vmatpush3.bf16.msra.mxu1 %v553_v63 }
 0x217   :  { %520 = vmatprep.subr.bf16.mxu1 %v633_v54 }
 0x21a   :  { %521 = vmatpush3.bf16.msra.mxu1 %v554_v0 }
 0x2e8   :  { %v254_v40 = vpop.f32.mrb[0].mxu1 }
 0x2e9   :  { %v255_v41 = vadd.f32 %v254_v40, %v166_v39  ;;  %v256_v42 = vpop.f32.mrb[1].mxu1 }
 0x2ea   :  { %v258_v43 = vpop.f32.mrb[2].mxu1  ;;  %v257_v47 = vadd.f32 %v256_v42, %v170_v46 }
 0x2eb   :  { %v483_v44 = vmul.f32 -1.442695, %v255_v41  ;;  %v259_v45 = vpop.f32.mrb[3].mxu1 }
 0x2ed   :  { %563 = vpow2.f32 %v483_v44 }
 0x2ee   :  { %565 = vtanh.f32 %v257_v47 }
 0x2f7   :  { %v564_v48 = vpop.eup %563 }
 0x2f8   :  { %v264_v49 = vadd.f32 1.0, %v564_v48  ;;  %v566_v50 = vpop.eup %565 }
 0x2fa   :  { %567 = vrcp.f32 %v264_v49 }
 0x304   :  { %v568_v51 = vpop.eup %567 }
 0x305   :  { %v268_v52 = vmul.f32 %v568_v51, %v566_v50 }
 0x307   :  { %569 = vtanh.f32 %v268_v52 }
 0x311   :  { %v570_v57 = vpop.eup %569 }
 0x312   :  { %271 = vrot.lane.b32.xlu1 %v570_v57, %s632_s18 }
 0x384   :  { %v272_v59 = vpop.permute.xlu1 %271 }
 0x385   :  { %v274_v60 = vmul.f32 %v568_v51, %v272_v59 }
 0x387   :  { %v275_v61 = vpack.c.bf16 %v274_v60, %v274_v60 }
 0x389   :  { %292 = vrot.lane.b32.xlu1 %v275_v61, %s632_s18 }
 0x3fb   :  { %v293_v62 = vpop.permute.xlu1 %292 }
 0x3fc   :  { %515 = vmatmul.mubr.msk.bf16.vlgmr.msra.gmra.mrb[4].mxu0 %vm216_vm1, %v293_v62 }
 0x4cf   :  { %v355_v2 = vpop.f32.mrb[4].mxu0 }
 0x4d0   :  { %v356_v3 = vadd.f32 %v484_v1, %v355_v2  ;;  %v516_v4 = vpop.f32.mrb[5].mxu0 }
 0x4d1   :  { %v358_v5 = vpop.f32.mrb[6].mxu0 }
 0x4d2   :  { %v490_v6 = vmul.f32 -1.442695, %v356_v3  ;;  %v517_v7 = vpop.f32.mrb[7].mxu0 }
 0x4d4   :  { %571 = vpow2.f32 %v490_v6 }
 0x4de   :  { %v572_v8 = vpop.eup %571 }
 0x4df   :  { %v364_v9 = vadd.f32 1.0, %v572_v8 }
 0x4e1   :  { %573 = vrcp.f32 %v364_v9 }
 0x4eb   :  { %v574_v10 = vpop.eup %573 }
 0x4ec   :  { %v367_v11 = vmul.f32 %v574_v10, %v356_v3 }
 0x4ee   :  { %v368_v12 = vpack.c.bf16 %v367_v11, %v367_v11 }
 0x4f0   :  { %523 = vmatmul.mubr.msk.bf16.vlgmr.msra.gmra.mrb[4].mxu1 %vm392_vm3, %v368_v12 }
 0x5c3   :  { %v430_v14 = vpop.f32.mrb[4].mxu1 }
 0x5c4   :  { %v431_v15 = vadd.f32 %v491_v13, %v430_v14  ;;  %v524_v16 = vpop.f32.mrb[5].mxu1 }
 0x5c5   :  { %v433_v17 = vpop.f32.mrb[6].mxu1 }
 0x5c6   :  { %v495_v18 = vmul.f32 -1.442695, %v431_v15  ;;  %v525_v19 = vpop.f32.mrb[7].mxu1 }
 0x5c8   :  { %575 = vpow2.f32 %v495_v18 }
 0x5d2   :  { %v576_v20 = vpop.eup %575 }
 0x5d3   :  { %v439_v21 = vadd.f32 1.0, %v576_v20 }
 0x5d5   :  { %577 = vrcp.f32 %v439_v21 }
 0x5df   :  { %v578_v22 = vpop.eup %577 }
 0x5e0   :  { %v442_v24 = vmul.f32 %v578_v22, %v431_v15 }
 0x5e2   :  { %v450_v25 = vmul.f32 %v496_v23, %v442_v24 }
 0x5e4   :  { %v451_v26 = vsel %vm93_vm0, %v450_v25, 0.0 }
 0x5e5   :  { %452 = vadd.xlane.f32.xlu0 %v451_v26 }
 0x672   :  { %v453_v28 = vpop.xlane.xlu0 %452 }
 0x673   :  { %v461_v29 = vadd.f32 %v497_v27, %v453_v28 }
 0x675   :  { %463 = vst.msk [vmem:[%s808_s11] sm:$0xff] %vm462_vm4, %v461_v29 }
 0x676   :  { %468 = vsyncpa [#allocation4], 1 }
 0x677   :  { %469 = vsyncpa [#allocation6], 1 }

</bundles_post_ra>
